<compile_context>
chip_gen: v7x
topology: tpu7x:2x2x1
jax: 0.10.0
libtpu: 0.0.40
codegen_flags: <defaults>
</compile_context>

<pallas_src>
import math
import jax
import jax.numpy as jnp
from jax.experimental import pallas as pl
from jax.experimental.pallas import tpu as pltpu

VMEM_SPEC = pl.BlockSpec(memory_space=pltpu.MemorySpace.VMEM)

# Safe on every generation: <= v7x scoped default (32 MiB), raises v5e's 16 MiB default.
_VMEM_LIMIT = 32 * 1024 * 1024


def _round_up(x, m):
    return ((x + m - 1) // m) * m


# ---------------------------------------------------------------------------
# Pallas kernels
# ---------------------------------------------------------------------------

def matmul_bias(a, b, bias, *, relu, out_dtype=jnp.float32, tile_m=256):
    """out = a @ b + bias (+ ReLU).  a:[M,K], b:[K,N], bias:[1,N].

    Grid over M row-tiles (pipelined; "parallel" so v7x shards across cores).
    K and N stay whole (K <= ~1.2k, N <= 384 in this model). MXU operands bf16,
    accumulation / bias / ReLU in f32.
    """
    M, K = a.shape
    _, N = b.shape

    tm = min(tile_m, _round_up(max(M, 1), 16))   # multiple of 16 (bf16 sublane pack)
    Mp = _round_up(M, tm)
    if Mp != M:
        a = jnp.pad(a, ((0, Mp - M), (0, 0)))

    a = a.astype(jnp.bfloat16)
    b = b.astype(jnp.bfloat16)
    bias = bias.astype(jnp.float32)

    def kernel(a_ref, b_ref, bias_ref, o_ref):
        acc = jnp.dot(a_ref[...], b_ref[...], preferred_element_type=jnp.float32)
        acc = acc + bias_ref[...]
        if relu:
            acc = jnp.maximum(acc, 0.0)
        o_ref[...] = acc.astype(o_ref.dtype)

    out = pl.pallas_call(
        kernel,
        out_shape=jax.ShapeDtypeStruct((Mp, N), out_dtype),
        grid=(Mp // tm,),
        in_specs=[
            pl.BlockSpec((tm, K), lambda i: (i, 0)),
            pl.BlockSpec((K, N), lambda i: (0, 0)),    # resident (constant block idx)
            pl.BlockSpec((1, N), lambda i: (0, 0)),
        ],
        out_specs=pl.BlockSpec((tm, N), lambda i: (i, 0)),
        compiler_params=pltpu.CompilerParams(
            dimension_semantics=("parallel",),
            vmem_limit_bytes=_VMEM_LIMIT,
        ),
    )(a, b, bias)
    return out[:M] if Mp != M else out


def layernorm_lastdim(x2d, gamma, beta, *, eps=1e-5, out_dtype=jnp.float32, tile_m=512):
    """Pallas LayerNorm over the last dim, tiled over rows. x2d:[M,S], gamma/beta:[1,S]."""
    M, S = x2d.shape
    tm = min(tile_m, _round_up(max(M, 1), 16))
    Mp = _round_up(M, tm)
    if Mp != M:
        x2d = jnp.pad(x2d, ((0, Mp - M), (0, 0)))

    def kernel(x_ref, g_ref, b_ref, o_ref):
        x = x_ref[...].astype(jnp.float32)
        mean = jnp.mean(x, axis=-1, keepdims=True)
        var = jnp.mean((x - mean) ** 2, axis=-1, keepdims=True)
        y = (x - mean) * jax.lax.rsqrt(var + eps)
        o_ref[...] = (y * g_ref[...] + b_ref[...]).astype(o_ref.dtype)

    out = pl.pallas_call(
        kernel,
        out_shape=jax.ShapeDtypeStruct((Mp, S), out_dtype),
        grid=(Mp // tm,),
        in_specs=[
            pl.BlockSpec((tm, S), lambda i: (i, 0)),
            pl.BlockSpec((1, S), lambda i: (0, 0)),
            pl.BlockSpec((1, S), lambda i: (0, 0)),
        ],
        out_specs=pl.BlockSpec((tm, S), lambda i: (i, 0)),
        compiler_params=pltpu.CompilerParams(
            dimension_semantics=("parallel",),
            vmem_limit_bytes=_VMEM_LIMIT,
        ),
    )(x2d, gamma, beta)
    return out[:M] if Mp != M else out


def gru_final_hidden_proj(gi_tnd, whh_t, b_hh, proj_w_t, proj_b):
    """GRU recurrence with the input projection precomputed, fused with the
    final Linear projection.  torch.nn.GRU semantics, h0 = 0, gate order r,z,n.

    gi_tnd  : [T, N, 3H]  precomputed  x_t @ W_ih^T + b_ih   (f32)
    whh_t   : [H, 3H],  b_hh : [1, 3H]
    proj_w_t: [H, G],   proj_b: [1, G]
    returns   h_T @ proj_w_t + proj_b : [N, G]
    """
    T, N, H3 = gi_tnd.shape
    H = whh_t.shape[0]
    G = proj_w_t.shape[1]

    def kernel(gi_ref, whh_ref, bhh_ref, pw_ref, pb_ref, o_ref):
        whh_bf = whh_ref[...].astype(jnp.bfloat16)   # hoisted out of the loop
        bhh = bhh_ref[...]

        def step(t, h):
            gi = gi_ref[t]                                          # [N, 3H] f32
            gh = jnp.dot(h.astype(jnp.bfloat16), whh_bf,
                         preferred_element_type=jnp.float32) + bhh  # [N, 3H]
            r = jax.nn.sigmoid(gi[:, 0:H] + gh[:, 0:H])
            z = jax.nn.sigmoid(gi[:, H:2 * H] + gh[:, H:2 * H])
            n = jnp.tanh(gi[:, 2 * H:3 * H] + r * gh[:, 2 * H:3 * H])
            return (1.0 - z) * n + z * h

        h0 = jnp.zeros((N, H), jnp.float32)
        hT = jax.lax.fori_loop(0, T, step, h0, unroll=min(8, max(T, 1)))
        # fused final Linear projection (epilogue)
        o_ref[...] = (jnp.dot(hT, pw_ref[...], preferred_element_type=jnp.float32)
                      + pb_ref[...])

    return pl.pallas_call(
        kernel,
        out_shape=jax.ShapeDtypeStruct((N, G), jnp.float32),
        in_specs=[VMEM_SPEC] * 5,
        out_specs=VMEM_SPEC,
        compiler_params=pltpu.CompilerParams(vmem_limit_bytes=_VMEM_LIMIT),
    )(gi_tnd, whh_t, b_hh, proj_w_t, proj_b)


# ---------------------------------------------------------------------------
# Glue: im2col for 3x3 / stride 2 / pad 1 conv on NHWC (XLA; stays in bf16)
# ---------------------------------------------------------------------------

def im2col_3x3_s2_p1(x_nhwc):
    N, H, W, C = x_nhwc.shape
    Ho = (H - 3 + 2) // 2 + 1
    Wo = (W - 3 + 2) // 2 + 1
    xp = jnp.pad(x_nhwc, ((0, 0), (1, 1), (1, 1), (0, 0)))
    cols = []
    for kh in range(3):
        for kw in range(3):
            cols.append(xp[:, kh:kh + 2 * (Ho - 1) + 1:2,
                           kw:kw + 2 * (Wo - 1) + 1:2, :])
    # patch feature order: (kh, kw, Cin)  -- matches weights stored HWIO-flattened
    patches = jnp.concatenate(cols, axis=-1)           # [N, Ho, Wo, 9*C]
    return patches.reshape(N * Ho * Wo, 9 * C), Ho, Wo


# ---------------------------------------------------------------------------
# Parameter construction (deterministic, synthetic)
# ---------------------------------------------------------------------------

def make_params(key, spec_channels, gin_channels):
    ref_enc_filters = [32, 32, 64, 64, 128, 128]
    filters = [1] + ref_enc_filters
    params = {}

    # LayerNorm(spec_channels): torch default init (weight=1, bias=0)
    params["ln_gamma"] = jnp.ones((1, spec_channels), jnp.float32)
    params["ln_beta"] = jnp.zeros((1, spec_channels), jnp.float32)

    conv_ws, conv_bs = [], []
    for i in range(len(ref_enc_filters)):
        key, k1, k2 = jax.random.split(key, 3)
        cin, cout = filters[i], filters[i + 1]
        fan_in = cin * 9
        bound = 1.0 / math.sqrt(fan_in)
        # stored as HWIO [3,3,cin,cout], flattened [(kh,kw,cin), cout]
        w = jax.random.uniform(k1, (3, 3, cin, cout), jnp.float32, -bound, bound)
        b = jax.random.uniform(k2, (1, cout), jnp.float32, -bound, bound)
        conv_ws.append(w.reshape(9 * cin, cout))
        conv_bs.append(b)
    params["conv_ws"] = conv_ws
    params["conv_bs"] = conv_bs

    # GRU: hidden = 256 // 2 = 128, input = 128 * out_channels
    H = 128
    L = spec_channels
    for _ in range(len(ref_enc_filters)):
        L = (L - 3 + 2 * 1) // 2 + 1
    D = ref_enc_filters[-1] * L
    bound = 1.0 / math.sqrt(H)
    key, k1, k2, k3, k4 = jax.random.split(key, 5)
    params["gru_wih_t"] = jax.random.uniform(k1, (D, 3 * H), jnp.float32, -bound, bound)
    params["gru_whh_t"] = jax.random.uniform(k2, (H, 3 * H), jnp.float32, -bound, bound)
    params["gru_bih"] = jax.random.uniform(k3, (1, 3 * H), jnp.float32, -bound, bound)
    params["gru_bhh"] = jax.random.uniform(k4, (1, 3 * H), jnp.float32, -bound, bound)

    # proj: Linear(128, gin_channels)
    bound = 1.0 / math.sqrt(H)
    key, k1, k2 = jax.random.split(key, 3)
    params["proj_w_t"] = jax.random.uniform(k1, (H, gin_channels), jnp.float32, -bound, bound)
    params["proj_b"] = jax.random.uniform(k2, (1, gin_channels), jnp.float32, -bound, bound)
    return params


# ---------------------------------------------------------------------------
# Forward pass
# ---------------------------------------------------------------------------

def reference_encoder_forward(inputs, params, spec_channels):
    # inputs: [N, Ty, n_mels]  ->  view(N, 1, -1, spec_channels)
    N = inputs.shape[0]
    out = inputs.reshape(N, 1, -1, spec_channels)  # NCHW with C=1
    T = out.shape[2]

    # LayerNorm over the mel dim (Pallas, row-tiled); bf16 output feeds the convs.
    out2d = layernorm_lastdim(out.reshape(N * T, spec_channels),
                              params["ln_gamma"], params["ln_beta"],
                              out_dtype=jnp.bfloat16)

    # NHWC activation layout for the conv stack: [N, H=time, W=mel, C]
    x = out2d.reshape(N, T, spec_channels, 1)

    for w, b in zip(params["conv_ws"], params["conv_bs"]):
        # TODO(synk): the 3x3/stride-2 patch gather still materializes in HBM
        # (XLA glue); full in-kernel halo fusion is the remaining bandwidth lever.
        patches, Ho, Wo = im2col_3x3_s2_p1(x)
        y = matmul_bias(patches, w, b, relu=True, out_dtype=jnp.bfloat16)
        x = y.reshape(x.shape[0], Ho, Wo, w.shape[1])          # NHWC, bf16

    # torch: out.transpose(1,2).view(N, T', -1)  with feature order (C, W')
    Np, Hp, Wp, Cp = x.shape
    gru_in = jnp.transpose(x, (0, 1, 3, 2)).reshape(Np, Hp, Cp * Wp)  # [N, T', D]

    # GRU: hoist the input projection into ONE tiled MXU matmul over all timesteps.
    x_tnd = jnp.transpose(gru_in, (1, 0, 2))                  # [T', N, D]
    Tg, Ng, D = x_tnd.shape
    H = params["gru_whh_t"].shape[0]
    gi = matmul_bias(x_tnd.reshape(Tg * Ng, D), params["gru_wih_t"],
                     params["gru_bih"], relu=False, out_dtype=jnp.float32)
    gi_tnd = gi.reshape(Tg, Ng, 3 * H)

    # Sequential recurrence + fused final Linear projection (Pallas).
    return gru_final_hidden_proj(gi_tnd, params["gru_whh_t"], params["gru_bhh"],
                                 params["proj_w_t"], params["proj_b"])


# ---------------------------------------------------------------------------

if __name__ == "__main__":
    N = 2
    Ty = 32             # time frames
    spec_channels = 32  # n_mels
    gin_channels = 256

    key = jax.random.PRNGKey(0)
    key, pkey, xkey = jax.random.split(key, 3)
    params = make_params(pkey, spec_channels, gin_channels)
    inputs = jax.random.normal(xkey, (N, Ty, spec_channels), jnp.float32)

    out = reference_encoder_forward(inputs, params, spec_channels)
    out = jax.block_until_ready(out)

    assert out.shape == (N, gin_channels), out.shape
    assert jnp.all(jnp.isfinite(out))
    print("KERNEL_OK")
</pallas_src>

<mosaic_0001>
module attributes {stable_mosaic.version = 11 : i64} {
  func.func @kernel(%arg0: i32, %arg1: memref<64x32xf32, #tpu.memory_space<vmem>>, %arg2: memref<1x32xf32, #tpu.memory_space<vmem>>, %arg3: memref<1x32xf32, #tpu.memory_space<vmem>>, %arg4: memref<64x32xbf16, #tpu.memory_space<vmem>>) attributes {dimension_semantics = [#tpu.dimension_semantics<parallel>], iteration_bounds = array<i64: 1>, scalar_prefetch = 0 : i64, scratch_operands = 0 : i64, tpu.core_type = #tpu.core_type<tc>, window_params = [{transform_indices = @transform_0, window_bounds = array<i64: 64, 32>}, {pipeline_mode = #tpu.pipeline_mode<synchronous>, transform_indices = @transform_1, window_bounds = array<i64: 1, 32>}, {pipeline_mode = #tpu.pipeline_mode<synchronous>, transform_indices = @transform_2, window_bounds = array<i64: 1, 32>}, {transform_indices = @transform_3, window_bounds = array<i64: 64, 32>}]} {
    %c0 = arith.constant 0 : index
    %c0_0 = arith.constant 0 : index
    %0 = vector.load %arg1[%c0, %c0_0] : memref<64x32xf32, #tpu.memory_space<vmem>>, vector<64x32xf32>
    %cst = arith.constant dense<0.000000e+00> : vector<64xf32>
    %1 = vector.multi_reduction <add>, %0, %cst [1] : vector<64x32xf32> to vector<64xf32>
    %2 = vector.shape_cast %1 : vector<64xf32> to vector<64x1xf32>
    %cst_1 = arith.constant 3.200000e+01 : f32
    %3 = vector.broadcast %cst_1 : f32 to vector<64x1xf32>
    %4 = arith.divf %2, %3 : vector<64x1xf32>
    %5 = vector.broadcast %4 : vector<64x1xf32> to vector<64x32xf32>
    %6 = arith.subf %0, %5 : vector<64x32xf32>
    %7 = arith.mulf %6, %6 : vector<64x32xf32>
    %cst_2 = arith.constant dense<0.000000e+00> : vector<64xf32>
    %8 = vector.multi_reduction <add>, %7, %cst_2 [1] : vector<64x32xf32> to vector<64xf32>
    %9 = vector.shape_cast %8 : vector<64xf32> to vector<64x1xf32>
    %cst_3 = arith.constant 3.200000e+01 : f32
    %10 = vector.broadcast %cst_3 : f32 to vector<64x1xf32>
    %11 = arith.divf %9, %10 : vector<64x1xf32>
    %12 = vector.broadcast %4 : vector<64x1xf32> to vector<64x32xf32>
    %13 = arith.subf %0, %12 : vector<64x32xf32>
    %cst_4 = arith.constant 9.99999974E-6 : f32
    %14 = vector.broadcast %cst_4 : f32 to vector<64x1xf32>
    %15 = arith.addf %11, %14 : vector<64x1xf32>
    %16 = math.rsqrt %15 : vector<64x1xf32>
    %17 = vector.broadcast %16 : vector<64x1xf32> to vector<64x32xf32>
    %18 = arith.mulf %13, %17 : vector<64x32xf32>
    %c0_5 = arith.constant 0 : index
    %c0_6 = arith.constant 0 : index
    %19 = vector.load %arg2[%c0_5, %c0_6] : memref<1x32xf32, #tpu.memory_space<vmem>>, vector<1x32xf32>
    %20 = vector.broadcast %19 : vector<1x32xf32> to vector<64x32xf32>
    %21 = arith.mulf %18, %20 : vector<64x32xf32>
    %c0_7 = arith.constant 0 : index
    %c0_8 = arith.constant 0 : index
    %22 = vector.load %arg3[%c0_7, %c0_8] : memref<1x32xf32, #tpu.memory_space<vmem>>, vector<1x32xf32>
    %23 = vector.broadcast %22 : vector<1x32xf32> to vector<64x32xf32>
    %24 = arith.addf %21, %23 : vector<64x32xf32>
    %25 = arith.truncf %24 : vector<64x32xf32> to vector<64x32xbf16>
    %c0_9 = arith.constant 0 : index
    %c0_10 = arith.constant 0 : index
    %26 = vector.load %arg4[%c0_9, %c0_10] : memref<64x32xbf16, #tpu.memory_space<vmem>>, vector<64x32xbf16>
    tpu.vector_store %arg4[%c0_9, %c0_10], %25 {strides = array<i32>} : memref<64x32xbf16, #tpu.memory_space<vmem>>, vector<64x32xbf16>,
    return
  }
  func.func @transform_0(%arg0: i32) -> (i32, i32) {
    %c0_i32 = arith.constant 0 : i32
    %c0_i32_0 = arith.constant 0 : i32
    return %arg0, %c0_i32 : i32, i32
  }
  func.func @transform_1(%arg0: i32) -> (i32, i32) {
    %c0_i32 = arith.constant 0 : i32
    %c0_i32_0 = arith.constant 0 : i32
    %c0_i32_1 = arith.constant 0 : i32
    return %c0_i32, %c0_i32_0 : i32, i32
  }
  func.func @transform_2(%arg0: i32) -> (i32, i32) {
    %c0_i32 = arith.constant 0 : i32
    %c0_i32_0 = arith.constant 0 : i32
    %c0_i32_1 = arith.constant 0 : i32
    return %c0_i32, %c0_i32_0 : i32, i32
  }
  func.func @transform_3(%arg0: i32) -> (i32, i32) {
    %c0_i32 = arith.constant 0 : i32
    %c0_i32_0 = arith.constant 0 : i32
    return %arg0, %c0_i32 : i32, i32
  }
}

</mosaic_0001>

<bundles_post_ra>
// kernel: tpu_custom_call.1
= control target key start
LH: loop header
LB: loop body
LE: loop exit
PB: predicated region body
PF: predicated region fallthrough
CT: control target
= control target key end

     0   :  { %vm22_vm0 = vcmask 261120   ;;  %vm190_vm1 = vcmask 257024   ;;  %s375_s0 = inlined_call_operand.vmem [shape: f32[64,32], index: 0, kind: input, shape index: {}]   ;;  %s376_s1 = inlined_call_operand.vmem [shape: f32[1,32], index: 1, kind: input, shape index: {}]   ;;  %s377_s2 = inlined_call_operand.vmem [shape: f32[1,32], index: 2, kind: input, shape index: {}]   ;;  %s378_s3 = inlined_call_operand.vmem [shape: bf16[64,32], index: 3, kind: output, shape index: {}]  }
   0x1   :  { %v14_v0 = vld [vmem:[%s375_s0] sm:$0xff]  ;;  %v16_v1 = vld [vmem:[%s375_s0 + $0x10] sm:$0xff]  ;;  %v15_v2 = vld [vmem:[%s375_s0 + $0x8] sm:$0xff] }
   0x2   :  { %v23_v3 = vsel %vm22_vm0, %v14_v0, 0.0  ;;  %v29_v4 = vsel %vm22_vm0, %v16_v1, 0.0  ;;  %v17_v5 = vld [vmem:[%s375_s0 + $0x18] sm:$0xff]  ;;  %v26_v6 = vsel %vm22_vm0, %v15_v2, 0.0  ;;  %v18_v8 = vld [vmem:[%s375_s0 + $0x20] sm:$0xff]  ;;  %v19_v9 = vld [vmem:[%s375_s0 + $0x28] sm:$0xff] }
   0x3   :  { %24 = vadd.xlane.f32.xlu0 %v23_v3  ;;  %30 = vadd.xlane.f32.xlu1 %v29_v4  ;;  %v32_v7 = vsel %vm22_vm0, %v17_v5, 0.0  ;;  %v35_v10 = vsel %vm22_vm0, %v18_v8, 0.0  ;;  %v38_v11 = vsel %vm22_vm0, %v19_v9, 0.0  ;;  %v20_v12 = vld [vmem:[%s375_s0 + $0x30] sm:$0xff]  ;;  %v21_v13 = vld [vmem:[%s375_s0 + $0x38] sm:$0xff] }
   0x4   :  { %v41_v14 = vsel %vm22_vm0, %v20_v12, 0.0  ;;  %v44_v15 = vsel %vm22_vm0, %v21_v13, 0.0 }
   0x7   :  { %27 = vadd.xlane.f32.xlu0 %v26_v6  ;;  %33 = vadd.xlane.f32.xlu1 %v32_v7 }
   0xb   :  { %36 = vadd.xlane.f32.xlu0 %v35_v10  ;;  %39 = vadd.xlane.f32.xlu1 %v38_v11 }
   0xf   :  { %42 = vadd.xlane.f32.xlu0 %v41_v14  ;;  %45 = vadd.xlane.f32.xlu1 %v44_v15 }
  0x90   :  { %v25_v16 = vpop.xlane.xlu0 %24  ;;  %v31_v17 = vpop.xlane.xlu1 %30 }
  0x91   :  { %v48_v18 = vmul.f32 0.03125, %v25_v16  ;;  %v50_v19 = vmul.f32 0.03125, %v31_v17  ;;  %v204_v17 = vld [vmem:[%s377_s2] ss:$0 sm:$0xff] }
  0x93   :  { %v289_v20 = vsub.f32 %v14_v0, %v48_v18  ;;  %v291_v21 = vsub.f32 %v16_v1, %v50_v19 }
  0x94   :  { %v28_v22 = vpop.xlane.xlu0 %27  ;;  %v34_v23 = vpop.xlane.xlu1 %33 }
  0x95   :  { %v49_v24 = vmul.f32 0.03125, %v28_v22  ;;  %v51_v25 = vmul.f32 0.03125, %v34_v23  ;;  %v64_v26 = vmul.f32 %v289_v20, %v289_v20  ;;  %v66_v27 = vmul.f32 %v291_v21, %v291_v21 }
  0x97   :  { %v297_v28 = vsub.f32 %v15_v2, %v49_v24  ;;  %v299_v29 = vsub.f32 %v17_v5, %v51_v25  ;;  %v72_v30 = vsel %vm22_vm0, %v64_v26, 0.0  ;;  %v78_v33 = vsel %vm22_vm0, %v66_v27, 0.0 }
  0x98   :  { %73 = vadd.xlane.f32.xlu0 %v72_v30  ;;  %v37_v31 = vpop.xlane.xlu0 %36  ;;  %v40_v32 = vpop.xlane.xlu1 %39 }
  0x99   :  { %v52_v34 = vmul.f32 0.03125, %v37_v31  ;;  %v53_v35 = vmul.f32 0.03125, %v40_v32  ;;  %v65_v36 = vmul.f32 %v297_v28, %v297_v28  ;;  %v67_v37 = vmul.f32 %v299_v29, %v299_v29 }
  0x9b   :  { %v307_v38 = vsub.f32 %v18_v8, %v52_v34  ;;  %v309_v39 = vsub.f32 %v19_v9, %v53_v35  ;;  %v75_v40 = vsel %vm22_vm0, %v65_v36, 0.0  ;;  %v81_v43 = vsel %vm22_vm0, %v67_v37, 0.0 }
  0x9c   :  { %79 = vadd.xlane.f32.xlu0 %v78_v33  ;;  %76 = vadd.xlane.f32.xlu1 %v75_v40  ;;  %v43_v41 = vpop.xlane.xlu0 %42  ;;  %v46_v42 = vpop.xlane.xlu1 %45 }
  0x9d   :  { %v54_v44 = vmul.f32 0.03125, %v43_v41  ;;  %v55_v45 = vmul.f32 0.03125, %v46_v42  ;;  %v68_v46 = vmul.f32 %v307_v38, %v307_v38  ;;  %v69_v47 = vmul.f32 %v309_v39, %v309_v39 }
  0x9f   :  { %v317_v48 = vsub.f32 %v20_v12, %v54_v44  ;;  %v319_v49 = vsub.f32 %v21_v13, %v55_v45  ;;  %v84_v50 = vsel %vm22_vm0, %v68_v46, 0.0  ;;  %v87_v51 = vsel %vm22_vm0, %v69_v47, 0.0  ;;  %v203_v12 = vld [vmem:[%s376_s1] ss:$0 sm:$0xff] }
  0xa0   :  { %82 = vadd.xlane.f32.xlu1 %v81_v43  ;;  %85 = vadd.xlane.f32.xlu0 %v84_v50 }
  0xa1   :  { %v70_v52 = vmul.f32 %v317_v48, %v317_v48  ;;  %v71_v53 = vmul.f32 %v319_v49, %v319_v49 }
  0xa3   :  { %v90_v54 = vsel %vm22_vm0, %v70_v52, 0.0  ;;  %v93_v55 = vsel %vm22_vm0, %v71_v53, 0.0 }
  0xa4   :  { %88 = vadd.xlane.f32.xlu1 %v87_v51  ;;  %91 = vadd.xlane.f32.xlu0 %v90_v54 }
  0xa8   :  { %94 = vadd.xlane.f32.xlu1 %v93_v55 }
 0x125   :  { %v74_v56 = vpop.xlane.xlu0 %73 }
 0x126   :  { %v96_v57 = vmul.f32 0.03125, %v74_v56 }
 0x128   :  { %v104_v58 = vadd.f32 1e-05, %v96_v57 }
 0x129   :  { %v77_v59 = vpop.xlane.xlu1 %76  ;;  %v80_v60 = vpop.xlane.xlu0 %79 }
 0x12a   :  { %221 = vrsqrt.f32 %v104_v58  ;;  %v97_v61 = vmul.f32 0.03125, %v77_v59  ;;  %v98_v62 = vmul.f32 0.03125, %v80_v60 }
 0x12c   :  { %v105_v63 = vadd.f32 1e-05, %v97_v61  ;;  %v106_v0 = vadd.f32 1e-05, %v98_v62 }
 0x12d   :  { %v83_v1 = vpop.xlane.xlu1 %82  ;;  %v86_v2 = vpop.xlane.xlu0 %85 }
 0x12e   :  { %223 = vrsqrt.f32 %v105_v63  ;;  %v99_v3 = vmul.f32 0.03125, %v83_v1  ;;  %v100_v4 = vmul.f32 0.03125, %v86_v2 }
 0x12f   :  { %225 = vrsqrt.f32 %v106_v0 }
 0x130   :  { %v107_v5 = vadd.f32 1e-05, %v99_v3  ;;  %v108_v6 = vadd.f32 1e-05, %v100_v4 }
 0x131   :  { %v89_v7 = vpop.xlane.xlu1 %88  ;;  %v92_v8 = vpop.xlane.xlu0 %91 }
 0x132   :  { %227 = vrsqrt.f32 %v107_v5  ;;  %v101_v9 = vmul.f32 0.03125, %v89_v7  ;;  %v102_v10 = vmul.f32 0.03125, %v92_v8 }
 0x133   :  { %229 = vrsqrt.f32 %v108_v6 }
 0x134   :  { %v222_v11 = vpop.eup %221  ;;  %v109_v13 = vadd.f32 1e-05, %v101_v9  ;;  %v110_v14 = vadd.f32 1e-05, %v102_v10 }
 0x135   :  { %v120_v15 = vmul.f32 %v222_v11, %v289_v20  ;;  %v95_v16 = vpop.xlane.xlu1 %94 }
 0x136   :  { %231 = vrsqrt.f32 %v109_v13  ;;  %v103_v18 = vmul.f32 0.03125, %v95_v16 }
 0x137   :  { %v135_v19 = vmul.f32 %v203_v12, %v120_v15  ;;  %233 = vrsqrt.f32 %v110_v14 }
 0x138   :  { %v224_v22 = vpop.eup %223  ;;  %v111_v23 = vadd.f32 1e-05, %v103_v18 }
 0x139   :  { %v226_v24 = vpop.eup %225  ;;  %v150_v25 = vadd.f32 %v204_v17, %v135_v19  ;;  %v121_v26 = vmul.f32 %v224_v22, %v297_v28 }
 0x13a   :  { %v122_v27 = vmul.f32 %v226_v24, %v291_v21  ;;  %235 = vrsqrt.f32 %v111_v23 }
 0x13b   :  { %v213_v20 = vpack.c.bf16 %v150_v25, %v150_v25  ;;  %v136_v30 = vmul.f32 %v203_v12, %v121_v26 }
 0x13c   :  { %v228_v31 = vpop.eup %227  ;;  %v137_v32 = vmul.f32 %v203_v12, %v122_v27 }
 0x13d   :  { %v230_v33 = vpop.eup %229  ;;  %191 = vst.msk [vmem:[%s378_s3] sm:$0xf] %vm190_vm1, %v213_v20  ;;  %v151_v34 = vadd.f32 %v204_v17, %v136_v30  ;;  %v123_v35 = vmul.f32 %v228_v31, %v299_v29 }
 0x13e   :  { %v152_v36 = vadd.f32 %v204_v17, %v137_v32  ;;  %v124_v28 = vmul.f32 %v230_v33, %v307_v38 }
 0x13f   :  { %v214_v37 = vpack.c.bf16 %v151_v34, %v151_v34  ;;  %v138_v40 = vmul.f32 %v203_v12, %v123_v35 }
 0x140   :  { %v232_v21 = vpop.eup %231  ;;  %v215_v41 = vpack.c.bf16 %v152_v36, %v152_v36  ;;  %v139_v42 = vmul.f32 %v203_v12, %v124_v28 }
 0x141   :  { %v234_v43 = vpop.eup %233  ;;  %192 = vst.msk [vmem:[%s378_s3 + $0x4] sm:$0xf] %vm190_vm1, %v214_v37  ;;  %v153_v44 = vadd.f32 %v204_v17, %v138_v40  ;;  %v125_v45 = vmul.f32 %v232_v21, %v309_v39 }
 0x142   :  { %193 = vst.msk [vmem:[%s378_s3 + $0x8] sm:$0xf] %vm190_vm1, %v215_v41  ;;  %v154_v29 = vadd.f32 %v204_v17, %v139_v42  ;;  %v126_v38 = vmul.f32 %v234_v43, %v317_v48 }
 0x143   :  { %v216_v46 = vpack.c.bf16 %v153_v44, %v153_v44  ;;  %v140_v47 = vmul.f32 %v203_v12, %v125_v45 }
 0x144   :  { %v236_v50 = vpop.eup %235  ;;  %v217_v51 = vpack.c.bf16 %v154_v29, %v154_v29  ;;  %v141_v52 = vmul.f32 %v203_v12, %v126_v38 }
 0x145   :  { %194 = vst.msk [vmem:[%s378_s3 + $0xc] sm:$0xf] %vm190_vm1, %v216_v46  ;;  %v155_v53 = vadd.f32 %v204_v17, %v140_v47  ;;  %v127_v39 = vmul.f32 %v236_v50, %v319_v49 }
 0x146   :  { %195 = vst.msk [vmem:[%s378_s3 + $0x10] sm:$0xf] %vm190_vm1, %v217_v51  ;;  %v156_v54 = vadd.f32 %v204_v17, %v141_v52 }
 0x147   :  { %v218_v48 = vpack.c.bf16 %v155_v53, %v155_v53  ;;  %v142_v55 = vmul.f32 %v203_v12, %v127_v39 }
 0x148   :  { %v219_v56 = vpack.c.bf16 %v156_v54, %v156_v54 }
 0x149   :  { %196 = vst.msk [vmem:[%s378_s3 + $0x14] sm:$0xf] %vm190_vm1, %v218_v48  ;;  %v157_v57 = vadd.f32 %v204_v17, %v142_v55 }
 0x14a   :  { %197 = vst.msk [vmem:[%s378_s3 + $0x18] sm:$0xf] %vm190_vm1, %v219_v56 }
 0x14b   :  { %v220_v49 = vpack.c.bf16 %v157_v57, %v157_v57 }
 0x14d   :  { %198 = vst.msk [vmem:[%s378_s3 + $0x1c] sm:$0xf] %vm190_vm1, %v220_v49 }

</bundles_post_ra>
